<compile_context>
chip_gen: v7x
topology: tpu7x:2x2x1
jax: 0.10.0
libtpu: 0.0.40
codegen_flags: <defaults>
</compile_context>

<pallas_src>
import jax
import jax.numpy as jnp
from jax.experimental import pallas as pl
from jax.experimental.pallas import tpu as pltpu

_MIN_TM = 16   # bf16 packs 16 sublanes per vreg
_LANE = 128


def _round_up(x, m):
    return ((x + m - 1) // m) * m


def _ffn_kernel(x_ref, w1_ref, b1_ref, w2_ref, b2_ref, o_ref):
    # x_ref:  [tm, d_model] (bf16)
    # w1_ref: [d_model, tf] (bf16)     b1_ref: [1, tf]      (f32)
    # w2_ref: [tf, d_model] (bf16)     b2_ref: [1, d_model] (f32)
    # o_ref:  [tm, d_model] (f32)  -- doubles as the accumulator: its block
    #                                 index is constant along k, so it stays
    #                                 VMEM-resident across the d_ff reduction.
    k = pl.program_id(1)

    @pl.when(k == 0)
    def _():
        o_ref[...] = jnp.zeros_like(o_ref)

    # First matmul tile (bf16 x bf16 -> f32 on the MXU), bias + ReLU in f32.
    h = jnp.dot(x_ref[...], w1_ref[...], preferred_element_type=jnp.float32)
    h = jnp.maximum(h + b1_ref[...], 0.0)
    # Dropout (eval mode) == identity.
    # TODO(synk): training-mode dropout (pltpu.prng_seed + stateful_bernoulli).

    # Second matmul: accumulate this d_ff tile's contribution into the output.
    o_ref[...] += jnp.dot(h.astype(w2_ref.dtype), w2_ref[...],
                          preferred_element_type=jnp.float32)

    @pl.when(k == pl.num_programs(1) - 1)
    def _():
        o_ref[...] += b2_ref[...]


def _tpu_generation():
    """Best-effort TPU generation from device_kind; 0 if unknown."""
    try:
        kind = jax.devices()[0].device_kind.lower()
    except Exception:
        return 0
    for g in (7, 6, 5, 4):
        if f"v{g}" in kind or f"tpu{g}" in kind:
            return g
    return 0


def _plan_tiles(M, d_model, d_ff, out_itemsize):
    """Pick (tm, tf, vmem_limit) per TPU generation."""
    gen = _tpu_generation()
    if gen >= 7:       # 2 TCs, 64 MiB VMEM/TC, ~3.2 TB/s HBM
        tm_target, tf_target, vmem_cap = 512, 512, 56 << 20
    elif gen == 6:     # 1 TC, 128 MiB VMEM, crossover needs tm ~ 700+
        tm_target, tf_target, vmem_cap = 1024, 512, 100 << 20
    elif gen == 5:     # v5e: tm ~ 256-512 already balanced
        tm_target, tf_target, vmem_cap = 512, 512, 96 << 20
    else:              # unknown: size conservatively for a 64 MiB VMEM chip
        tm_target, tf_target, vmem_cap = 256, 512, 48 << 20

    # Row tile: multiple of 16 (bf16 sublane packing), no larger than needed.
    tm = min(tm_target, _round_up(M, _MIN_TM))
    # v7x shards the "parallel" row axis across its two TensorCores; make sure
    # there are at least two row tiles whenever M allows it.
    if gen >= 7:
        tm = min(tm, max(_MIN_TM, _round_up(M, 2 * _MIN_TM) // 2))

    def budget(tm_, tf_):
        return (2 * tm_ * d_model * 2                # x tile (bf16, dbl-buffered)
                + 2 * d_model * tf_ * 2              # W1 tile
                + 2 * tf_ * d_model * 2              # W2 tile
                + 2 * (tf_ + d_model) * 4            # biases (f32)
                + 2 * tm_ * d_model * out_itemsize   # out/accumulator tile
                + tm_ * tf_ * 6)                     # in-kernel h (f32 + bf16 copy)

    # Prefer fully VMEM-resident weights: one HBM pass for W1+W2 in total.
    if budget(tm, d_ff) <= int(0.9 * vmem_cap):
        tf = d_ff
    else:
        if d_ff % _LANE != 0:
            tf = d_ff                                # tiny/odd models only
        else:
            # Largest multiple of 128 that divides d_ff, capped at tf_target.
            tf, t = _LANE, _LANE
            while t <= min(tf_target, d_ff):
                if d_ff % t == 0:
                    tf = t
                t += _LANE
        # Shrink the row tile until everything fits the per-generation cap.
        while budget(tm, tf) > vmem_cap and tm > _MIN_TM:
            tm = max(_MIN_TM, _round_up(tm // 2, _MIN_TM))

    vmem_limit = int(min(max(budget(tm, tf) + (4 << 20), 16 << 20), vmem_cap))
    return tm, tf, vmem_limit


@jax.jit
def feed_forward(x, w1, b1, w2, b2):
    """Inference FeedForward: relu(x @ W1 + b1) @ W2 + b2.

    x:  [B, S, d_model].  w1: [d_model, d_ff], w2: [d_ff, d_model]
    (transpose of PyTorch nn.Linear).  Pass weights already in bf16 to avoid
    a per-call HBM cast pass (init_params does this).
    """
    B, S, d_model = x.shape
    d_ff = w1.shape[1]
    M = B * S
    out_dtype = jnp.float32

    tm, tf, vmem_limit = _plan_tiles(M, d_model, d_ff,
                                     jnp.dtype(out_dtype).itemsize)
    M_pad = _round_up(M, tm)

    x2d = x.reshape(M, d_model)
    if M_pad != M:
        x2d = jnp.pad(x2d, ((0, M_pad - M), (0, 0)))
    x2d = x2d.astype(jnp.bfloat16)
    # No-ops when the caller keeps persistent bf16 weights (recommended).
    w1c = w1.astype(jnp.bfloat16)
    w2c = w2.astype(jnp.bfloat16)
    b1_2d = b1.reshape(1, d_ff).astype(jnp.float32)
    b2_2d = b2.reshape(1, d_model).astype(jnp.float32)

    grid = (M_pad // tm, d_ff // tf)

    flops = 4 * M_pad * d_model * d_ff          # two matmuls, 2 flops per MAC
    weight_passes = 1 if tf == d_ff else grid[0]
    bytes_accessed = (
        M_pad * d_model * 2                             # x read (bf16)
        + weight_passes * (2 * d_model * d_ff * 2)      # W1+W2 (bf16)
        + M_pad * d_model * jnp.dtype(out_dtype).itemsize)  # output write

    out2d = pl.pallas_call(
        _ffn_kernel,
        out_shape=jax.ShapeDtypeStruct((M_pad, d_model), out_dtype),
        grid_spec=pltpu.PrefetchScalarGridSpec(
            num_scalar_prefetch=0,
            grid=grid,
            in_specs=[
                pl.BlockSpec((tm, d_model), lambda i, k: (i, 0)),  # x rows
                pl.BlockSpec((d_model, tf), lambda i, k: (0, k)),  # W1 tile
                pl.BlockSpec((1, tf), lambda i, k: (0, k)),        # b1 tile
                pl.BlockSpec((tf, d_model), lambda i, k: (k, 0)),  # W2 tile
                pl.BlockSpec((1, d_model), lambda i, k: (0, 0)),   # b2
            ],
            out_specs=pl.BlockSpec((tm, d_model), lambda i, k: (i, 0)),
        ),
        compiler_params=pltpu.CompilerParams(
            dimension_semantics=("parallel", "arbitrary"),
            vmem_limit_bytes=vmem_limit,
        ),
        cost_estimate=pl.CostEstimate(flops=flops, transcendentals=0,
                                      bytes_accessed=bytes_accessed),
    )(x2d, w1c, b1_2d, w2c, b2_2d)

    if M_pad != M:
        out2d = out2d[:M]
    return out2d.reshape(B, S, d_model).astype(x.dtype)


def init_params(key, d_model):
    """nn.Linear-style uniform init. Weights are stored [in, out] (transpose
    of PyTorch's [out, in]) and converted to bf16 ONCE here so the hot path
    never pays a per-call f32->bf16 HBM pass."""
    d_ff = 4 * d_model
    k1, k2, k3, k4 = jax.random.split(key, 4)
    bound1 = 1.0 / jnp.sqrt(d_model)
    bound2 = 1.0 / jnp.sqrt(d_ff)
    w1 = jax.random.uniform(k1, (d_model, d_ff), jnp.float32, -bound1, bound1)
    b1 = jax.random.uniform(k2, (d_ff,), jnp.float32, -bound1, bound1)
    w2 = jax.random.uniform(k3, (d_ff, d_model), jnp.float32, -bound2, bound2)
    b2 = jax.random.uniform(k4, (d_model,), jnp.float32, -bound2, bound2)
    return w1.astype(jnp.bfloat16), b1, w2.astype(jnp.bfloat16), b2


if __name__ == "__main__":
    d_model = 128          # -> hidden d_ff = 512 (lane-dense, last dim 128)
    batch, seq = 2, 8
    dropout = 0.1          # unused at inference (identity)

    key = jax.random.PRNGKey(0)
    kx, kp = jax.random.split(key)
    x = jax.random.normal(kx, (batch, seq, d_model), jnp.float32)
    w1, b1, w2, b2 = init_params(kp, d_model)

    out = feed_forward(x, w1, b1, w2, b2)
    out = jax.block_until_ready(out)

    # Reference with matching numerics (bf16 MXU inputs, f32 accumulation).
    f32 = lambda a: a.astype(jnp.float32)
    x2 = f32(x.reshape(-1, d_model).astype(jnp.bfloat16))
    h = jnp.maximum(
        jnp.dot(x2, f32(w1), precision=jax.lax.Precision.HIGHEST) + b1, 0.0)
    ref = jnp.dot(f32(h.astype(jnp.bfloat16)), f32(w2),
                  precision=jax.lax.Precision.HIGHEST) + b2
    ref = ref.reshape(batch, seq, d_model)

    assert out.shape == (batch, seq, d_model)
    assert jnp.allclose(out, ref, atol=5e-3, rtol=5e-3), float(
        jnp.max(jnp.abs(out - ref)))

    print("KERNEL_OK")
</pallas_src>

<mosaic_0001>
module attributes {stable_mosaic.version = 11 : i64} {
  func.func @_ffn_kernel(%arg0: i32, %arg1: i32, %arg2: memref<16x128xbf16, #tpu.memory_space<vmem>>, %arg3: memref<128x512xbf16, #tpu.memory_space<vmem>>, %arg4: memref<1x512xf32, #tpu.memory_space<vmem>>, %arg5: memref<512x128xbf16, #tpu.memory_space<vmem>>, %arg6: memref<1x128xf32, #tpu.memory_space<vmem>>, %arg7: memref<16x128xf32, #tpu.memory_space<vmem>>) attributes {dimension_semantics = [#tpu.dimension_semantics<parallel>, #tpu.dimension_semantics<arbitrary>], iteration_bounds = array<i64: 1, 1>, scalar_prefetch = 0 : i64, scratch_operands = 0 : i64, tpu.core_type = #tpu.core_type<tc>, window_params = [{transform_indices = @transform_0, window_bounds = array<i64: 16, 128>}, {transform_indices = @transform_1, window_bounds = array<i64: 128, 512>}, {transform_indices = @transform_2, window_bounds = array<i64: 1, 512>}, {transform_indices = @transform_3, window_bounds = array<i64: 512, 128>}, {pipeline_mode = #tpu.pipeline_mode<synchronous>, transform_indices = @transform_4, window_bounds = array<i64: 1, 128>}, {transform_indices = @transform_5, window_bounds = array<i64: 16, 128>}]} {
    %c0_i32 = arith.constant 0 : i32
    %0 = arith.cmpi eq, %arg1, %c0_i32 : i32
    %1 = arith.extui %0 : i1 to i32
    %c0_i32_0 = arith.constant 0 : i32
    %2 = arith.cmpi ne, %1, %c0_i32_0 : i32
    scf.if %2 {
      %cst_16 = arith.constant 0.000000e+00 : f32
      %20 = vector.broadcast %cst_16 : f32 to vector<16x128xf32>
      %c0_17 = arith.constant 0 : index
      %c0_18 = arith.constant 0 : index
      %21 = vector.load %arg7[%c0_17, %c0_18] : memref<16x128xf32, #tpu.memory_space<vmem>>, vector<16x128xf32>
      tpu.vector_store %arg7[%c0_17, %c0_18], %20 {strides = array<i32>} : memref<16x128xf32, #tpu.memory_space<vmem>>, vector<16x128xf32>,
    } else {
    }
    %c0 = arith.constant 0 : index
    %c0_1 = arith.constant 0 : index
    %3 = vector.load %arg2[%c0, %c0_1] : memref<16x128xbf16, #tpu.memory_space<vmem>>, vector<16x128xbf16>
    %c0_2 = arith.constant 0 : index
    %c0_3 = arith.constant 0 : index
    %4 = vector.load %arg3[%c0_2, %c0_3] : memref<128x512xbf16, #tpu.memory_space<vmem>>, vector<128x512xbf16>
    %cst = arith.constant dense<0.000000e+00> : vector<16x512xf32>
    %5 = tpu.matmul %3, %4, %cst {dimension_numbers = #tpu.dot_dimension_numbers<[1], [0], [0], [1], [0, 0, 1, 1], [], []>} : vector<16x128xbf16>, vector<128x512xbf16>, vector<16x512xf32> -> vector<16x512xf32>
    %c0_4 = arith.constant 0 : index
    %c0_5 = arith.constant 0 : index
    %6 = vector.load %arg4[%c0_4, %c0_5] : memref<1x512xf32, #tpu.memory_space<vmem>>, vector<1x512xf32>
    %7 = vector.broadcast %6 : vector<1x512xf32> to vector<16x512xf32>
    %8 = arith.addf %5, %7 : vector<16x512xf32>
    %cst_6 = arith.constant 0.000000e+00 : f32
    %9 = vector.broadcast %cst_6 : f32 to vector<16x512xf32>
    %10 = arith.maximumf %8, %9 : vector<16x512xf32>
    %c0_7 = arith.constant 0 : index
    %c0_8 = arith.constant 0 : index
    %11 = vector.load %arg7[%c0_7, %c0_8] : memref<16x128xf32, #tpu.memory_space<vmem>>, vector<16x128xf32>
    %12 = arith.truncf %10 : vector<16x512xf32> to vector<16x512xbf16>
    %c0_9 = arith.constant 0 : index
    %c0_10 = arith.constant 0 : index
    %13 = vector.load %arg5[%c0_9, %c0_10] : memref<512x128xbf16, #tpu.memory_space<vmem>>, vector<512x128xbf16>
    %cst_11 = arith.constant dense<0.000000e+00> : vector<16x128xf32>
    %14 = tpu.matmul %12, %13, %cst_11 {dimension_numbers = #tpu.dot_dimension_numbers<[1], [0], [0], [1], [0, 0, 1, 1], [], []>} : vector<16x512xbf16>, vector<512x128xbf16>, vector<16x128xf32> -> vector<16x128xf32>
    %15 = arith.addf %11, %14 : vector<16x128xf32>
    %c0_12 = arith.constant 0 : index
    %c0_13 = arith.constant 0 : index
    %16 = vector.load %arg7[%c0_12, %c0_13] : memref<16x128xf32, #tpu.memory_space<vmem>>, vector<16x128xf32>
    tpu.vector_store %arg7[%c0_12, %c0_13], %15 {strides = array<i32>} : memref<16x128xf32, #tpu.memory_space<vmem>>, vector<16x128xf32>,
    %c0_i32_14 = arith.constant 0 : i32
    %17 = arith.cmpi eq, %arg1, %c0_i32_14 : i32
    %18 = arith.extui %17 : i1 to i32
    %c0_i32_15 = arith.constant 0 : i32
    %19 = arith.cmpi ne, %18, %c0_i32_15 : i32
    scf.if %19 {
      %c0_16 = arith.constant 0 : index
      %c0_17 = arith.constant 0 : index
      %20 = vector.load %arg7[%c0_16, %c0_17] : memref<16x128xf32, #tpu.memory_space<vmem>>, vector<16x128xf32>
      %c0_18 = arith.constant 0 : index
      %c0_19 = arith.constant 0 : index
      %21 = vector.load %arg6[%c0_18, %c0_19] : memref<1x128xf32, #tpu.memory_space<vmem>>, vector<1x128xf32>
      %22 = vector.broadcast %21 : vector<1x128xf32> to vector<16x128xf32>
      %23 = arith.addf %20, %22 : vector<16x128xf32>
      %c0_20 = arith.constant 0 : index
      %c0_21 = arith.constant 0 : index
      %24 = vector.load %arg7[%c0_20, %c0_21] : memref<16x128xf32, #tpu.memory_space<vmem>>, vector<16x128xf32>
      tpu.vector_store %arg7[%c0_20, %c0_21], %23 {strides = array<i32>} : memref<16x128xf32, #tpu.memory_space<vmem>>, vector<16x128xf32>,
    } else {
    }
    return
  }
  func.func @transform_0(%arg0: i32, %arg1: i32) -> (i32, i32) {
    %c0_i32 = arith.constant 0 : i32
    %c0_i32_0 = arith.constant 0 : i32
    return %arg0, %c0_i32 : i32, i32
  }
  func.func @transform_1(%arg0: i32, %arg1: i32) -> (i32, i32) {
    %c0_i32 = arith.constant 0 : i32
    %c0_i32_0 = arith.constant 0 : i32
    return %c0_i32, %arg1 : i32, i32
  }
  func.func @transform_2(%arg0: i32, %arg1: i32) -> (i32, i32) {
    %c0_i32 = arith.constant 0 : i32
    %c0_i32_0 = arith.constant 0 : i32
    return %c0_i32, %arg1 : i32, i32
  }
  func.func @transform_3(%arg0: i32, %arg1: i32) -> (i32, i32) {
    %c0_i32 = arith.constant 0 : i32
    %c0_i32_0 = arith.constant 0 : i32
    return %arg1, %c0_i32 : i32, i32
  }
  func.func @transform_4(%arg0: i32, %arg1: i32) -> (i32, i32) {
    %c0_i32 = arith.constant 0 : i32
    %c0_i32_0 = arith.constant 0 : i32
    %c0_i32_1 = arith.constant 0 : i32
    return %c0_i32, %c0_i32_0 : i32, i32
  }
  func.func @transform_5(%arg0: i32, %arg1: i32) -> (i32, i32) {
    %c0_i32 = arith.constant 0 : i32
    %c0_i32_0 = arith.constant 0 : i32
    return %arg0, %c0_i32 : i32, i32
  }
}

</mosaic_0001>

<bundles_post_ra>
// kernel: feed_forward.1
= control target key start
LH: loop header
LB: loop body
LE: loop exit
PB: predicated region body
PF: predicated region fallthrough
CT: control target
= control target key end

     0   :  { %10 = vsyncpa [#allocation3], 0  ;;  %s1113_s0 = inlined_call_operand.vmem [shape: bf16[16,128], index: 0, kind: input, shape index: {}]   ;;  %s1114_s1 = inlined_call_operand.hbm [shape: bf16[128,512], index: 1, kind: input, shape index: {}]   ;;  %s1115_s2 = inlined_call_operand.vmem [shape: f32[1,512], index: 2, kind: input, shape index: {}]   ;;  %s1116_s3 = inlined_call_operand.hbm [shape: bf16[512,128], index: 3, kind: input, shape index: {}]   ;;  %s1117_s4 = inlined_call_operand.vmem [shape: f32[1,128], index: 4, kind: input, shape index: {}]   ;;  %s1118_s5 = inlined_call_operand.hbm [shape: f32[16,128], index: 5, kind: output, shape index: {}]  }
   0x1   :  { %11 = vsyncpa [#allocation6], 0 }
   0x2   :  { %12 = vsyncpa [#allocation4], 0  ;;  %s1028_s18 = smov [#allocation2]   ;;  %s956_s22 = scalar_lea.hbm %s1114_s1, 4096 }
   0x3   :  { %s20_s19 = sshll.u32 %s1028_s18, 4  ;;  %p957_p0 = scmp.ne.s32.totalorder %s1114_s1, %s956_s22  ;;  %s21_s19 = int_to_ptr.vmem [resolvable:$true] %s20_s19 }
   0x4   :  { %p960_p1 = scmp.lt.u32.totalorder %s956_s22, %s1114_s1 }
   0x6   :  { %p962_p2 = pnand %p960_p1, %p957_p0 }
   0x8   :  { %965 = shalt.err (!%p962_p2)
}
   0x9   :  { %s966_s27 = scalar_lea.vmem %s21_s19, 4096  ;;  %p971_p4 = scmp.lt.s32.totalorder %s21_s19, %s21_s19 }
   0xa   :  { %p967_p3 = scmp.ne.s32.totalorder %s21_s19, %s966_s27  ;;  %p972_p5 = scmp.lt.s32.totalorder %s966_s27, %s966_s27 }
   0xc   :  { %p973_p6 = por %p972_p5, %p971_p4 }
   0xe   :  { %p974_p7 = pnand %p973_p6, %p967_p3 }
  0x10   :  { %977 = shalt.err (!%p974_p7)
}
  0x11   :  { %s1029_s28 = smov 256   ;;  %s1030_s29 = smov 16  }
  0x12   :  { %26 = dma.hbm_to_vmem [thread:$0]  %s1114_s1, 4096, %s21_s19, [#allocation3], %s1029_s28, %s1029_s28, %s1030_s29  }
  0x13   :  { %s1031_s7 = smov [#allocation5]   ;;  %s978_s11 = scalar_lea.hbm %s1116_s3, 4096 }
  0x14   :  { %s34_s8 = sshll.u32 %s1031_s7, 4  ;;  %p979_p8 = scmp.ne.s32.totalorder %s1116_s3, %s978_s11  ;;  %s35_s8 = int_to_ptr.vmem [resolvable:$true] %s34_s8 }
  0x15   :  { %p982_p9 = scmp.lt.u32.totalorder %s978_s11, %s1116_s3 }
  0x17   :  { %p984_p10 = pnand %p982_p9, %p979_p8 }
  0x19   :  { %987 = shalt.err (!%p984_p10)
}
  0x1a   :  { %s988_s16 = scalar_lea.vmem %s35_s8, 4096  ;;  %p993_p12 = scmp.lt.s32.totalorder %s35_s8, %s35_s8 }
  0x1b   :  { %p989_p11 = scmp.ne.s32.totalorder %s35_s8, %s988_s16  ;;  %p994_p13 = scmp.lt.s32.totalorder %s988_s16, %s988_s16 }
  0x1d   :  { %p995_p0 = por %p994_p13, %p993_p12 }
  0x1f   :  { %p996_p1 = pnand %p995_p0, %p989_p11 }
  0x21   :  { %999 = shalt.err (!%p996_p1)
}
  0x22   :  { %s1032_s1 = smov 64   ;;  %s1033_s17 = smov 4  }
  0x23   :  { %40 = dma.hbm_to_vmem [thread:$0]  %s1116_s3, 4096, %s35_s8, [#allocation6], %s1032_s1, %s1032_s1, %s1033_s17  }
  0x24   :  { %1022 = dma.done.wait [#allocation3], 4096  }
  0x25   :  { %1023 = vsyncadd [#allocation3], 4294963200 }
  0x26   :  { %1024 = dma.done.wait [#allocation6], 4096  }
  0x27   :  { %1025 = vsyncadd [#allocation6], 4294963200  ;;  %v1034_v0 = vmov 0   ;;  %v875_v1 = vld [vmem:[#allocation2 + $0x4] ss:$16 sps:$4 sm:$0xff]   ;;  %v928_v38 = vld [vmem:[#allocation5 + $0x48] sm:$0xff]  }
  0x28   :  { %310 = vmatprep.mubr.bf16.mxu0 %v1034_v0  ;;  %353 = vmatprep.mubr.bf16.mxu1 %v1034_v0  ;;  %v877_v2 = vld [vmem:[#allocation2 + $0xc] ss:$16 sps:$4 sm:$0xff]   ;;  %v879_v3 = vld [vmem:[#allocation2] ss:$16 sps:$4 sm:$0xff]   ;;  %v880_v4 = vld [vmem:[#allocation2 + $0x8] ss:$16 sps:$4 sm:$0xff]  }
  0x29   :  { %278 = vmatprep.subr.bf16.mxu0 %v875_v1  ;;  %321 = vmatprep.subr.bf16.mxu1 %v877_v2  ;;  %v881_v5 = vld [vmem:[#allocation2 + $0x24] ss:$16 sps:$4 sm:$0xff]   ;;  %v883_v6 = vld [vmem:[#allocation2 + $0x2c] ss:$16 sps:$4 sm:$0xff]   ;;  %v885_v7 = vld [vmem:[#allocation2 + $0x20] ss:$16 sps:$4 sm:$0xff]   ;;  %v92_v2 = vlaneseq }
  0x2a   :  { %279 = vmatpush1.bf16.msra.mxu0 %v879_v3  ;;  %322 = vmatpush1.bf16.msra.mxu1 %v880_v4  ;;  %v886_v8 = vld [vmem:[#allocation2 + $0x28] ss:$16 sps:$4 sm:$0xff]   ;;  %v887_v9 = vld [vmem:[#allocation2 + $0x44] ss:$16 sps:$4 sm:$0xff]   ;;  %v889_v10 = vld [vmem:[#allocation2 + $0x4c] ss:$16 sps:$4 sm:$0xff]  }
  0x2b   :  { %280 = vmatprep.subr.bf16.mxu0 %v881_v5  ;;  %323 = vmatprep.subr.bf16.mxu1 %v883_v6  ;;  %v891_v11 = vld [vmem:[#allocation2 + $0x40] ss:$16 sps:$4 sm:$0xff]   ;;  %v892_v12 = vld [vmem:[#allocation2 + $0x48] ss:$16 sps:$4 sm:$0xff]   ;;  %v893_v13 = vld [vmem:[#allocation2 + $0x64] ss:$16 sps:$4 sm:$0xff]  }
  0x2c   :  { %v895_v14 = vld [vmem:[#allocation2 + $0x6c] ss:$16 sps:$4 sm:$0xff]   ;;  %v897_v15 = vld [vmem:[#allocation2 + $0x60] ss:$16 sps:$4 sm:$0xff]   ;;  %v898_v16 = vld [vmem:[#allocation2 + $0x68] ss:$16 sps:$4 sm:$0xff]  }
  0x2d   :  { %v899_v17 = vld [vmem:[#allocation2 + $0x84] ss:$16 sps:$4 sm:$0xff]   ;;  %v901_v18 = vld [vmem:[#allocation2 + $0x8c] ss:$16 sps:$4 sm:$0xff]   ;;  %v903_v19 = vld [vmem:[#allocation2 + $0x80] ss:$16 sps:$4 sm:$0xff]  }
  0x2e   :  { %281 = vmatpush1.bf16.msra.mxu0 %v885_v7  ;;  %324 = vmatpush1.bf16.msra.mxu1 %v886_v8  ;;  %v904_v20 = vld [vmem:[#allocation2 + $0x88] ss:$16 sps:$4 sm:$0xff]   ;;  %v905_v21 = vld [vmem:[#allocation2 + $0xa4] ss:$16 sps:$4 sm:$0xff]   ;;  %v907_v22 = vld [vmem:[#allocation2 + $0xac] ss:$16 sps:$4 sm:$0xff]  }
  0x2f   :  { %282 = vmatprep.subr.bf16.mxu0 %v887_v9  ;;  %325 = vmatprep.subr.bf16.mxu1 %v889_v10  ;;  %v909_v23 = vld [vmem:[#allocation2 + $0xa0] ss:$16 sps:$4 sm:$0xff]   ;;  %v910_v24 = vld [vmem:[#allocation2 + $0xa8] ss:$16 sps:$4 sm:$0xff]   ;;  %v911_v25 = vld [vmem:[#allocation2 + $0xc4] ss:$16 sps:$4 sm:$0xff]  }
  0x30   :  { %v913_v26 = vld [vmem:[#allocation2 + $0xcc] ss:$16 sps:$4 sm:$0xff]   ;;  %v915_v27 = vld [vmem:[#allocation2 + $0xc0] ss:$16 sps:$4 sm:$0xff]   ;;  %v916_v28 = vld [vmem:[#allocation2 + $0xc8] ss:$16 sps:$4 sm:$0xff]  }
  0x31   :  { %v917_v29 = vld [vmem:[#allocation2 + $0xe4] ss:$16 sps:$4 sm:$0xff]   ;;  %v919_v30 = vld [vmem:[#allocation2 + $0xec] ss:$16 sps:$4 sm:$0xff]   ;;  %v921_v31 = vld [vmem:[#allocation2 + $0xe0] ss:$16 sps:$4 sm:$0xff]  }
  0x32   :  { %283 = vmatpush1.bf16.msra.mxu0 %v891_v11  ;;  %326 = vmatpush1.bf16.msra.mxu1 %v892_v12  ;;  %v922_v32 = vld [vmem:[#allocation2 + $0xe8] ss:$16 sps:$4 sm:$0xff]   ;;  %v924_v33 = vld [vmem:[#allocation5 + $0x40] sm:$0xff]   ;;  %v932_v42 = vld [vmem:[#allocation5 + $0x50] sm:$0xff]   ;;  %v93_v3 = vshrl.u32 %v92_v2, 7  ;;  %s1035_s23 = smov [#allocation7]  }
  0x33   :  { %284 = vmatprep.subr.bf16.mxu0 %v893_v13  ;;  %327 = vmatprep.subr.bf16.mxu1 %v895_v14  ;;  %v923_v34 = vld [vmem:[%s1113_s0] sm:$0xff]   ;;  %v929_v39 = vld [vmem:[#allocation5 + $0xc8] sm:$0xff]   ;;  %v933_v43 = vld [vmem:[#allocation5 + $0xd0] sm:$0xff]   ;;  %s741_s24 = sshll.u32 %s1035_s23, 4  ;;  %s742_s24 = int_to_ptr.vmem [resolvable:$true] %s741_s24 }
  0x34   :  { %v925_v35 = vld [vmem:[#allocation5 + $0xc0] sm:$0xff]   ;;  %v930_v40 = vld [vmem:[#allocation5 + $0x8] sm:$0xff]   ;;  %v934_v44 = vld [vmem:[#allocation5 + $0x10] sm:$0xff]   ;;  %v94_v4 = vsub.s32 0, %v93_v3  ;;  %v102_v5 = vsub.s32 2, %v93_v3  ;;  %v98_v7 = vsub.s32 1, %v93_v3  ;;  %p1005_p3 = scmp.lt.s32.totalorder %s742_s24, %s742_s24 }
  0x35   :  { %v926_v36 = vld [vmem:[#allocation5] sm:$0xff]   ;;  %v931_v41 = vld [vmem:[#allocation5 + $0x88] sm:$0xff]   ;;  %v935_v45 = vld [vmem:[#allocation5 + $0x90] sm:$0xff]   ;;  %v106_v8 = vsub.s32 3, %v93_v3  ;;  %s1000_s25 = scalar_lea.vmem %s742_s24, 256 }
  0x36   :  { %285 = vmatpush1.bf16.msra.mxu0 %v897_v15  ;;  %328 = vmatpush1.bf16.msra.mxu1 %v898_v16  ;;  %v927_v37 = vld [vmem:[#allocation5 + $0x80] sm:$0xff]   ;;  %v936_v46 = vld [vmem:[#allocation5 + $0x58] sm:$0xff]   ;;  %v944_v54 = vld [vmem:[#allocation5 + $0x68] sm:$0xff]   ;;  %p1001_p2 = scmp.ne.s32.totalorder %s742_s24, %s1000_s25  ;;  %p1006_p4 = scmp.lt.s32.totalorder %s1000_s25, %s1000_s25 }
  0x37   :  { %286 = vmatprep.subr.bf16.mxu0 %v899_v17  ;;  %329 = vmatprep.subr.bf16.mxu1 %v901_v18  ;;  %v937_v47 = vld [vmem:[#allocation5 + $0xd8] sm:$0xff]   ;;  %v940_v50 = vld [vmem:[#allocation5 + $0x60] sm:$0xff]   ;;  %v945_v55 = vld [vmem:[#allocation5 + $0xe8] sm:$0xff]  }
  0x38   :  { %v938_v48 = vld [vmem:[#allocation5 + $0x18] sm:$0xff]   ;;  %v941_v51 = vld [vmem:[#allocation5 + $0xe0] sm:$0xff]   ;;  %v946_v56 = vld [vmem:[#allocation5 + $0x28] sm:$0xff]   ;;  %p1007_p5 = por %p1006_p4, %p1005_p3 }
  0x39   :  { %v939_v49 = vld [vmem:[#allocation5 + $0x98] sm:$0xff]   ;;  %v942_v52 = vld [vmem:[#allocation5 + $0x20] sm:$0xff]   ;;  %v947_v57 = vld [vmem:[#allocation5 + $0xa8] sm:$0xff]  }
  0x3a   :  { %287 = vmatpush1.bf16.msra.mxu0 %v903_v19  ;;  %330 = vmatpush1.bf16.msra.mxu1 %v904_v20  ;;  %v943_v53 = vld [vmem:[#allocation5 + $0xa0] sm:$0xff]   ;;  %v948_v58 = vld [vmem:[#allocation5 + $0x70] sm:$0xff]   ;;  %v952_v62 = vld [vmem:[#allocation5 + $0x78] sm:$0xff]   ;;  %p1008_p6 = pnand %p1007_p5, %p1001_p2 }
  0x3b   :  { %288 = vmatprep.subr.bf16.mxu0 %v905_v21  ;;  %331 = vmatprep.subr.bf16.mxu1 %v907_v22  ;;  %v949_v59 = vld [vmem:[#allocation5 + $0xf0] sm:$0xff]   ;;  %v953_v63 = vld [vmem:[#allocation5 + $0xf8] sm:$0xff]   ;;  %v90_v6 = vld [vmem:[%s1115_s2] sm:$0xf] }
  0x3c   :  { %v950_v60 = vld [vmem:[#allocation5 + $0x30] sm:$0xff]   ;;  %v954_v0 = vld [vmem:[#allocation5 + $0x38] sm:$0xff]   ;;  %v95_v9 = vrot.slane %v90_v6, %v94_v4  ;;  %v103_v10 = vrot.slane %v90_v6, %v102_v5  ;;  %v99_v11 = vrot.slane %v90_v6, %v98_v7  ;;  %v107_v12 = vrot.slane %v90_v6, %v106_v8 }
  0x3d   :  { %v951_v61 = vld [vmem:[#allocation5 + $0xb0] sm:$0xff]   ;;  %v955_v1 = vld [vmem:[#allocation5 + $0xb8] sm:$0xff]  }
  0x3e   :  { %289 = vmatpush1.bf16.msra.mxu0 %v909_v23  ;;  %332 = vmatpush1.bf16.msra.mxu1 %v910_v24 }
  0x3f   :  { %290 = vmatprep.subr.bf16.mxu0 %v911_v25  ;;  %333 = vmatprep.subr.bf16.mxu1 %v913_v26 }
  0x42   :  { %291 = vmatpush1.bf16.msra.mxu0 %v915_v27  ;;  %334 = vmatpush1.bf16.msra.mxu1 %v916_v28 }
  0x43   :  { %292 = vmatprep.subr.bf16.mxu0 %v917_v29  ;;  %335 = vmatprep.subr.bf16.mxu1 %v919_v30 }
  0x46   :  { %293 = vmatpush1.bf16.msra.mxu0 %v921_v31  ;;  %336 = vmatpush1.bf16.msra.mxu1 %v922_v32 }
  0x47   :  { %820 = vmatprep.subr.bf16.mxu0 %v924_v33  ;;  %842 = vmatprep.subr.bf16.mxu1 %v925_v35 }
  0x49   :  { %311 = vmatmul.mubr.bf16.vlgmr.msra.gmra.mrb[0].mxu0 %v923_v34  ;;  %354 = vmatmul.mubr.bf16.vlgmr.msra.gmra.mrb[0].mxu1 %v923_v34 }
  0x4a   :  { %821 = vmatpush3.bf16.msra.mxu0 %v926_v36  ;;  %843 = vmatpush3.bf16.msra.mxu1 %v927_v37 }
  0x4b   :  { %822 = vmatprep.subr.bf16.mxu0 %v928_v38  ;;  %844 = vmatprep.subr.bf16.mxu1 %v929_v39 }
  0x4e   :  { %823 = vmatpush3.bf16.msra.mxu0 %v930_v40  ;;  %845 = vmatpush3.bf16.msra.mxu1 %v931_v41 }
  0x4f   :  { %824 = vmatprep.subr.bf16.mxu0 %v932_v42  ;;  %846 = vmatprep.subr.bf16.mxu1 %v933_v43 }
  0x52   :  { %825 = vmatpush3.bf16.msra.mxu0 %v934_v44  ;;  %847 = vmatpush3.bf16.msra.mxu1 %v935_v45 }
  0x53   :  { %826 = vmatprep.subr.bf16.mxu0 %v936_v46  ;;  %848 = vmatprep.subr.bf16.mxu1 %v937_v47 }
  0x56   :  { %827 = vmatpush3.bf16.msra.mxu0 %v938_v48  ;;  %849 = vmatpush3.bf16.msra.mxu1 %v939_v49 }
  0x57   :  { %828 = vmatprep.subr.bf16.mxu0 %v940_v50  ;;  %850 = vmatprep.subr.bf16.mxu1 %v941_v51 }
  0x5a   :  { %829 = vmatpush3.bf16.msra.mxu0 %v942_v52  ;;  %851 = vmatpush3.bf16.msra.mxu1 %v943_v53 }
  0x5b   :  { %830 = vmatprep.subr.bf16.mxu0 %v944_v54  ;;  %852 = vmatprep.subr.bf16.mxu1 %v945_v55  ;;  %v819_v54 = vld [vmem:[%s1117_s4] ss:$0 sm:$0xff] }
  0x5e   :  { %831 = vmatpush3.bf16.msra.mxu0 %v946_v56  ;;  %853 = vmatpush3.bf16.msra.mxu1 %v947_v57 }
  0x5f   :  { %832 = vmatprep.subr.bf16.mxu0 %v948_v58  ;;  %854 = vmatprep.subr.bf16.mxu1 %v949_v59 }
  0x62   :  { %833 = vmatpush3.bf16.msra.mxu0 %v950_v60  ;;  %855 = vmatpush3.bf16.msra.mxu1 %v951_v61 }
  0x63   :  { %834 = vmatprep.subr.bf16.mxu0 %v952_v62  ;;  %856 = vmatprep.subr.bf16.mxu1 %v953_v63 }
  0x66   :  { %835 = vmatpush3.bf16.msra.mxu0 %v954_v0  ;;  %857 = vmatpush3.bf16.msra.mxu1 %v955_v1 }
 0x11c   :  { %v312_v13 = vpop.f32.mrb[0].mxu0  ;;  %v355_v14 = vpop.f32.mrb[0].mxu1 }
 0x11d   :  { %v313_v15 = vadd.f32 %v312_v13, %v95_v9  ;;  %v356_v16 = vadd.f32 %v355_v14, %v103_v10  ;;  %v314_v17 = vpop.f32.mrb[1].mxu0  ;;  %v357_v18 = vpop.f32.mrb[1].mxu1 }
 0x11e   :  { %v315_v19 = vadd.f32 %v314_v17, %v99_v11  ;;  %v358_v20 = vadd.f32 %v357_v18, %v107_v12  ;;  %v316_v21 = vpop.f32.mrb[2].mxu0  ;;  %v359_v22 = vpop.f32.mrb[2].mxu1 }
 0x11f   :  { %v317_v23 = vadd.f32 %v316_v21, %v95_v9  ;;  %v360_v24 = vadd.f32 %v359_v22, %v103_v10  ;;  %v318_v25 = vpop.f32.mrb[3].mxu0  ;;  %v361_v26 = vpop.f32.mrb[3].mxu1  ;;  %v364_v29 = vmax.f32 %v313_v15, 0.0  ;;  %v366_v30 = vmax.f32 %v356_v16, 0.0 }
 0x120   :  { %v319_v27 = vadd.f32 %v318_v25, %v99_v11  ;;  %v362_v28 = vadd.f32 %v361_v26, %v107_v12  ;;  %v365_v33 = vmax.f32 %v315_v19, 0.0  ;;  %v367_v34 = vmax.f32 %v358_v20, 0.0 }
 0x121   :  { %v368_v31 = vmax.f32 %v317_v23, 0.0  ;;  %v370_v32 = vmax.f32 %v360_v24, 0.0 }
 0x122   :  { %v369_v35 = vmax.f32 %v319_v27, 0.0  ;;  %v371_v36 = vmax.f32 %v362_v28, 0.0 }
 0x123   :  { %v374_v37 = vpack.c.bf16 %v368_v31, %v364_v29  ;;  %v376_v38 = vpack.c.bf16 %v370_v32, %v366_v30 }
 0x124   :  { %v375_v39 = vpack.c.bf16 %v369_v35, %v365_v33  ;;  %v377_v40 = vpack.c.bf16 %v371_v36, %v367_v34 }
 0x126   :  { %666 = vmatprep.mubr.bf16.mxu0 %v375_v39  ;;  %707 = vmatprep.mubr.bf16.mxu1 %v377_v40 }
 0x127   :  { %667 = vmatmul.mubr.bf16.vlgmr.msra.gmra.mrb[4].mxu0 %v374_v37  ;;  %708 = vmatmul.mubr.bf16.vlgmr.msra.gmra.mrb[4].mxu1 %v376_v38 }
 0x1fa   :  { %v836_v41 = vpop.f32.mrb[4].mxu0  ;;  %v858_v42 = vpop.f32.mrb[4].mxu1 }
 0x1fb   :  { %v837_v43 = vpop.f32.mrb[5].mxu0  ;;  %v859_v44 = vpop.f32.mrb[5].mxu1 }
 0x1fc   :  { %v838_v45 = vadd.f32 %v837_v43, %v836_v41  ;;  %v860_v46 = vadd.f32 %v859_v44, %v858_v42  ;;  %v839_v47 = vpop.f32.mrb[6].mxu0  ;;  %v861_v48 = vpop.f32.mrb[6].mxu1 }
 0x1fd   :  { %v840_v49 = vpop.f32.mrb[7].mxu0  ;;  %v862_v50 = vpop.f32.mrb[7].mxu1 }
 0x1fe   :  { %v710_v51 = vadd.f32 %v860_v46, %v838_v45  ;;  %v841_v52 = vadd.f32 %v840_v49, %v839_v47  ;;  %v863_v53 = vadd.f32 %v862_v50, %v861_v48 }
 0x200   :  { %v713_v55 = vadd.f32 %v863_v53, %v841_v52  ;;  %v732_v56 = vadd.f32 %v819_v54, %v710_v51 }
 0x202   :  { %v733_v57 = vadd.f32 %v819_v54, %v713_v55  ;;  %734 = vst [vmem:[#allocation7] sm:$0xff] %v732_v56 }
 0x204   :  { %735 = vst [vmem:[#allocation7 + $0x8] sm:$0xff] %v733_v57 }
 0x205   :  { %1011 = shalt.err (!%p1008_p6)
}
 0x206   :  { %s1012_s28 = scalar_lea.hbm %s1118_s5, 256 }
 0x207   :  { %p1013_p7 = scmp.ne.s32.totalorder %s1118_s5, %s1012_s28  ;;  %p1016_p8 = scmp.lt.u32.totalorder %s1012_s28, %s1118_s5 }
 0x209   :  { %p1018_p9 = pnand %p1016_p8, %p1013_p7 }
 0x20b   :  { %1021 = shalt.err (!%p1018_p9)
}
 0x20c   :  { %s1036_s7 = smov 128   ;;  %s1037_s8 = smov 8  }
 0x20d   :  { %747 = dma.vmem_to_hbm [thread:$0]  %s742_s24, 256, %s1118_s5, [#allocation4], %s1036_s7, %s1036_s7, %s1037_s8  }
 0x20e   :  { %1026 = dma.done.wait [#allocation4], 256  }
 0x20f   :  { %1027 = vsyncadd [#allocation4], 4294967040 }
 0x210   :  { %751 = vsyncpa [#allocation3], 1 }
 0x211   :  { %752 = vsyncpa [#allocation6], 1 }
 0x212   :  { %753 = vsyncpa [#allocation4], 1 }

</bundles_post_ra>
